<compile_context>
chip_gen: v6e
topology: v6e:2x2x1
jax: 0.10.0
libtpu: 0.0.40
codegen_flags: <defaults>
</compile_context>

<pallas_src>
import jax
import jax.numpy as jnp
from jax.experimental import pallas as pl
from jax.experimental.pallas import tpu as pltpu

INPUT_SIZE = 6
HIDDEN_SIZE = 8
NUM_OUTPUTS = 3  # lat, lon, alt
LANE = 128


def _round_up(a, m):
    return -(-a // m) * m


# --------------------------------------------------------------------------- #
# Kernel: lane-dense fused affine.
#   x_ref : VMEM (INPUT_SIZE, tb)          transposed input tile (tb % 128 == 0)
#   w_ref : SMEM (INPUT_SIZE, NUM_OUTPUTS) folded weights
#   b_ref : SMEM (1, NUM_OUTPUTS)          folded biases
#   o_ref : VMEM (NUM_OUTPUTS, tb)         transposed output tile
# 18 scalar-broadcast VPU FMAs per tile; no MXU use, fully unmasked stores.
# --------------------------------------------------------------------------- #
def _fused_affine_kernel(x_ref, w_ref, b_ref, o_ref):
    x = x_ref[...]                                        # (6, tb) f32
    for j in range(NUM_OUTPUTS):                          # static unroll (3)
        acc = x[0:1, :] * w_ref[0, j] + b_ref[0, j]       # (1, tb)
        for k in range(1, INPUT_SIZE):                    # static unroll (5)
            acc = acc + x[k:k + 1, :] * w_ref[k, j]
        o_ref[j:j + 1, :] = acc


# --------------------------------------------------------------------------- #
# Param preprocessing (once, off the hot path): fold each Linear->Linear->
# Linear branch (no nonlinearities) into a single affine map and concatenate
# the three branches column-wise.
# --------------------------------------------------------------------------- #
def fold_params(params):
    w_cols, b_cols = [], []
    for br in ("1", "2", "3"):
        w1, b1 = params[f"w{br}_1"], params[f"b{br}_1"]
        w2, b2 = params[f"w{br}_2"], params[f"b{br}_2"]
        w4, b4 = params[f"w{br}_4"], params[f"b{br}_4"]
        w_eff = w1 @ w2 @ w4                 # (6, 1)
        b_eff = (b1 @ w2 + b2) @ w4 + b4     # (1, 1)
        w_cols.append(w_eff)
        b_cols.append(b_eff)
    return {
        "w": jnp.concatenate(w_cols, axis=1).astype(jnp.float32),  # (6, 3)
        "b": jnp.concatenate(b_cols, axis=1).astype(jnp.float32),  # (1, 3)
    }


# --------------------------------------------------------------------------- #
# Wrapper: transposes x to the lane-dense (6, B) layout, pads B to a tile
# multiple, streams (6, tb) blocks with weights resident in SMEM, and splits
# the (3, B) result into the module's dict of (B, 1) outputs via contiguous
# row slices.
# --------------------------------------------------------------------------- #
def prediction_model_forward(x, folded, *, row_tile=32768):
    B = x.shape[0]
    assert x.shape[1] == INPUT_SIZE, x.shape
    x = x.astype(jnp.float32)
    w, b = folded["w"], folded["b"]

    # ---- tile selection: lane-aligned, big tiles, >=2 steps when possible ---
    row_tile = max(LANE, _round_up(row_tile, LANE))
    b_lanes = _round_up(B, LANE)
    if b_lanes <= 2 * LANE:
        tb = b_lanes                                   # tiny batch: one block
    else:
        # at least 2 grid steps (v7x dual-TC sharding), capped at row_tile
        tb = min(row_tile, _round_up(b_lanes // 2, LANE))
    b_padded = _round_up(B, tb)
    grid = (b_padded // tb,)

    # ---- lane-dense, padded input ------------------------------------------
    # TODO(synk): if the upstream producer can emit x as (6, B) directly, this
    # XLA transpose disappears from the hot path.
    x_t = x.T                                          # (6, B)
    if b_padded != B:
        x_t = jnp.pad(x_t, ((0, 0), (0, b_padded - B)))

    # Double-buffered (6,tb) + (3,tb) f32 tiles (sublanes padded to 8 each).
    tile_bytes = 2 * (8 * tb * 4) * 2
    vmem_limit = int(max(4 << 20, min(48 << 20, 2 * tile_bytes)))

    out_t = pl.pallas_call(
        _fused_affine_kernel,
        grid=grid,
        in_specs=[
            pl.BlockSpec((INPUT_SIZE, tb), lambda i: (0, i)),          # x stream
            pl.BlockSpec(memory_space=pltpu.MemorySpace.SMEM),         # w (6,3)
            pl.BlockSpec(memory_space=pltpu.MemorySpace.SMEM),         # b (1,3)
        ],
        out_specs=pl.BlockSpec((NUM_OUTPUTS, tb), lambda i: (0, i)),
        out_shape=jax.ShapeDtypeStruct((NUM_OUTPUTS, b_padded), jnp.float32),
        compiler_params=pltpu.CompilerParams(
            dimension_semantics=("parallel",),     # shard batch tiles over TCs
            vmem_limit_bytes=vmem_limit,
        ),
    )(x_t, w, b)

    # Contiguous row slices of the (3, B_padded) output; reshape is free.
    return {
        "lat": out_t[0, :B].reshape(B, 1),
        "lon": out_t[1, :B].reshape(B, 1),
        "alt": out_t[2, :B].reshape(B, 1),
    }


# --------------------------------------------------------------------------- #
# Deterministic init matching the PyTorch module's layer shapes (x @ W + b
# convention) and an unfused pure-JAX reference of the exact PyTorch forward.
# --------------------------------------------------------------------------- #
def init_params(key):
    params = {}
    layer_dims = {"1": (INPUT_SIZE, HIDDEN_SIZE),
                  "2": (HIDDEN_SIZE, HIDDEN_SIZE),
                  "4": (HIDDEN_SIZE, 1)}
    for br in ("1", "2", "3"):
        for layer, (din, dout) in layer_dims.items():
            key, kw, kb = jax.random.split(key, 3)
            bound = 1.0 / (din ** 0.5)
            params[f"w{br}_{layer}"] = jax.random.uniform(
                kw, (din, dout), jnp.float32, -bound, bound)
            params[f"b{br}_{layer}"] = jax.random.uniform(
                kb, (1, dout), jnp.float32, -bound, bound)
    return params


def reference_forward(x, params):
    def branch(br):
        h = x @ params[f"w{br}_1"] + params[f"b{br}_1"]
        h = h @ params[f"w{br}_2"] + params[f"b{br}_2"]
        return h @ params[f"w{br}_4"] + params[f"b{br}_4"]
    return {"lat": branch("1"), "lon": branch("2"), "alt": branch("3")}


if __name__ == "__main__":
    key = jax.random.PRNGKey(0)
    key, kx, kx2 = jax.random.split(key, 3)
    params = init_params(key)
    folded = fold_params(params)

    # Small batch: single lane-padded block, one grid step.
    B = 8
    x = jax.random.normal(kx, (B, INPUT_SIZE), jnp.float32)
    out = prediction_model_forward(x, folded)
    jax.block_until_ready(out)
    ref = reference_forward(x, params)
    for name in ("lat", "lon", "alt"):
        assert out[name].shape == (B, 1), out[name].shape
        # Folding the affine chain reorders f32 accumulation slightly.
        assert jnp.allclose(out[name], ref[name], atol=1e-4, rtol=1e-4), name

    # Ragged batch (not a multiple of 128): exercises padding + a 2-step
    # "parallel" grid (v7x dual-TC path).
    B2 = 1000
    x2 = jax.random.normal(kx2, (B2, INPUT_SIZE), jnp.float32)
    out2 = prediction_model_forward(x2, folded)
    jax.block_until_ready(out2)
    ref2 = reference_forward(x2, params)
    for name in ("lat", "lon", "alt"):
        assert out2[name].shape == (B2, 1), out2[name].shape
        assert jnp.allclose(out2[name], ref2[name], atol=1e-4, rtol=1e-4), name

    print("KERNEL_OK")
</pallas_src>

<mosaic_0001>
module attributes {stable_mosaic.version = 11 : i64} {
  func.func @_fused_affine_kernel(%arg0: i32, %arg1: memref<6x128xf32, #tpu.memory_space<vmem>>, %arg2: memref<6x3xf32, #tpu.memory_space<smem>>, %arg3: memref<1x3xf32, #tpu.memory_space<smem>>, %arg4: memref<3x128xf32, #tpu.memory_space<vmem>>) attributes {dimension_semantics = [#tpu.dimension_semantics<parallel>], iteration_bounds = array<i64: 1>, scalar_prefetch = 0 : i64, scratch_operands = 0 : i64, tpu.core_type = #tpu.core_type<tc>, window_params = [{transform_indices = @transform_0, window_bounds = array<i64: 6, 128>}, {transform_indices = @transform_1, window_bounds = array<i64: 6, 3>}, {transform_indices = @transform_2, window_bounds = array<i64: 1, 3>}, {transform_indices = @transform_3, window_bounds = array<i64: 3, 128>}]} {
    %c0 = arith.constant 0 : index
    %c0_0 = arith.constant 0 : index
    %0 = vector.load %arg1[%c0, %c0_0] : memref<6x128xf32, #tpu.memory_space<vmem>>, vector<6x128xf32>
    %1 = vector.extract_strided_slice %0 {offsets = [0, 0], sizes = [1, 128], strides = [1, 1]} : vector<6x128xf32> to vector<1x128xf32>
    %c0_1 = arith.constant 0 : index
    %c0_2 = arith.constant 0 : index
    %2 = memref.load %arg2[%c0_1, %c0_2] : memref<6x3xf32, #tpu.memory_space<smem>>
    %3 = vector.broadcast %2 : f32 to vector<1x128xf32>
    %4 = arith.mulf %1, %3 : vector<1x128xf32>
    %c0_3 = arith.constant 0 : index
    %c0_4 = arith.constant 0 : index
    %5 = memref.load %arg3[%c0_3, %c0_4] : memref<1x3xf32, #tpu.memory_space<smem>>
    %6 = vector.broadcast %5 : f32 to vector<1x128xf32>
    %7 = arith.addf %4, %6 : vector<1x128xf32>
    %8 = vector.extract_strided_slice %0 {offsets = [1, 0], sizes = [1, 128], strides = [1, 1]} : vector<6x128xf32> to vector<1x128xf32>
    %c1 = arith.constant 1 : index
    %c0_5 = arith.constant 0 : index
    %9 = memref.load %arg2[%c1, %c0_5] : memref<6x3xf32, #tpu.memory_space<smem>>
    %10 = vector.broadcast %9 : f32 to vector<1x128xf32>
    %11 = arith.mulf %8, %10 : vector<1x128xf32>
    %12 = arith.addf %7, %11 : vector<1x128xf32>
    %13 = vector.extract_strided_slice %0 {offsets = [2, 0], sizes = [1, 128], strides = [1, 1]} : vector<6x128xf32> to vector<1x128xf32>
    %c2 = arith.constant 2 : index
    %c0_6 = arith.constant 0 : index
    %14 = memref.load %arg2[%c2, %c0_6] : memref<6x3xf32, #tpu.memory_space<smem>>
    %15 = vector.broadcast %14 : f32 to vector<1x128xf32>
    %16 = arith.mulf %13, %15 : vector<1x128xf32>
    %17 = arith.addf %12, %16 : vector<1x128xf32>
    %18 = vector.extract_strided_slice %0 {offsets = [3, 0], sizes = [1, 128], strides = [1, 1]} : vector<6x128xf32> to vector<1x128xf32>
    %c3 = arith.constant 3 : index
    %c0_7 = arith.constant 0 : index
    %19 = memref.load %arg2[%c3, %c0_7] : memref<6x3xf32, #tpu.memory_space<smem>>
    %20 = vector.broadcast %19 : f32 to vector<1x128xf32>
    %21 = arith.mulf %18, %20 : vector<1x128xf32>
    %22 = arith.addf %17, %21 : vector<1x128xf32>
    %23 = vector.extract_strided_slice %0 {offsets = [4, 0], sizes = [1, 128], strides = [1, 1]} : vector<6x128xf32> to vector<1x128xf32>
    %c4 = arith.constant 4 : index
    %c0_8 = arith.constant 0 : index
    %24 = memref.load %arg2[%c4, %c0_8] : memref<6x3xf32, #tpu.memory_space<smem>>
    %25 = vector.broadcast %24 : f32 to vector<1x128xf32>
    %26 = arith.mulf %23, %25 : vector<1x128xf32>
    %27 = arith.addf %22, %26 : vector<1x128xf32>
    %28 = vector.extract_strided_slice %0 {offsets = [5, 0], sizes = [1, 128], strides = [1, 1]} : vector<6x128xf32> to vector<1x128xf32>
    %c5 = arith.constant 5 : index
    %c0_9 = arith.constant 0 : index
    %29 = memref.load %arg2[%c5, %c0_9] : memref<6x3xf32, #tpu.memory_space<smem>>
    %30 = vector.broadcast %29 : f32 to vector<1x128xf32>
    %31 = arith.mulf %28, %30 : vector<1x128xf32>
    %32 = arith.addf %27, %31 : vector<1x128xf32>
    %c0_10 = arith.constant 0 : index
    %c0_11 = arith.constant 0 : index
    %33 = vector.load %arg4[%c0_10, %c0_11] : memref<3x128xf32, #tpu.memory_space<vmem>>, vector<1x128xf32>
    tpu.vector_store %arg4[%c0_10, %c0_11], %32 {strides = array<i32>} : memref<3x128xf32, #tpu.memory_space<vmem>>, vector<1x128xf32>,
    %34 = vector.extract_strided_slice %0 {offsets = [0, 0], sizes = [1, 128], strides = [1, 1]} : vector<6x128xf32> to vector<1x128xf32>
    %c0_12 = arith.constant 0 : index
    %c1_13 = arith.constant 1 : index
    %35 = memref.load %arg2[%c0_12, %c1_13] : memref<6x3xf32, #tpu.memory_space<smem>>
    %36 = vector.broadcast %35 : f32 to vector<1x128xf32>
    %37 = arith.mulf %34, %36 : vector<1x128xf32>
    %c0_14 = arith.constant 0 : index
    %c1_15 = arith.constant 1 : index
    %38 = memref.load %arg3[%c0_14, %c1_15] : memref<1x3xf32, #tpu.memory_space<smem>>
    %39 = vector.broadcast %38 : f32 to vector<1x128xf32>
    %40 = arith.addf %37, %39 : vector<1x128xf32>
    %41 = vector.extract_strided_slice %0 {offsets = [1, 0], sizes = [1, 128], strides = [1, 1]} : vector<6x128xf32> to vector<1x128xf32>
    %c1_16 = arith.constant 1 : index
    %c1_17 = arith.constant 1 : index
    %42 = memref.load %arg2[%c1_16, %c1_17] : memref<6x3xf32, #tpu.memory_space<smem>>
    %43 = vector.broadcast %42 : f32 to vector<1x128xf32>
    %44 = arith.mulf %41, %43 : vector<1x128xf32>
    %45 = arith.addf %40, %44 : vector<1x128xf32>
    %46 = vector.extract_strided_slice %0 {offsets = [2, 0], sizes = [1, 128], strides = [1, 1]} : vector<6x128xf32> to vector<1x128xf32>
    %c2_18 = arith.constant 2 : index
    %c1_19 = arith.constant 1 : index
    %47 = memref.load %arg2[%c2_18, %c1_19] : memref<6x3xf32, #tpu.memory_space<smem>>
    %48 = vector.broadcast %47 : f32 to vector<1x128xf32>
    %49 = arith.mulf %46, %48 : vector<1x128xf32>
    %50 = arith.addf %45, %49 : vector<1x128xf32>
    %51 = vector.extract_strided_slice %0 {offsets = [3, 0], sizes = [1, 128], strides = [1, 1]} : vector<6x128xf32> to vector<1x128xf32>
    %c3_20 = arith.constant 3 : index
    %c1_21 = arith.constant 1 : index
    %52 = memref.load %arg2[%c3_20, %c1_21] : memref<6x3xf32, #tpu.memory_space<smem>>
    %53 = vector.broadcast %52 : f32 to vector<1x128xf32>
    %54 = arith.mulf %51, %53 : vector<1x128xf32>
    %55 = arith.addf %50, %54 : vector<1x128xf32>
    %56 = vector.extract_strided_slice %0 {offsets = [4, 0], sizes = [1, 128], strides = [1, 1]} : vector<6x128xf32> to vector<1x128xf32>
    %c4_22 = arith.constant 4 : index
    %c1_23 = arith.constant 1 : index
    %57 = memref.load %arg2[%c4_22, %c1_23] : memref<6x3xf32, #tpu.memory_space<smem>>
    %58 = vector.broadcast %57 : f32 to vector<1x128xf32>
    %59 = arith.mulf %56, %58 : vector<1x128xf32>
    %60 = arith.addf %55, %59 : vector<1x128xf32>
    %61 = vector.extract_strided_slice %0 {offsets = [5, 0], sizes = [1, 128], strides = [1, 1]} : vector<6x128xf32> to vector<1x128xf32>
    %c5_24 = arith.constant 5 : index
    %c1_25 = arith.constant 1 : index
    %62 = memref.load %arg2[%c5_24, %c1_25] : memref<6x3xf32, #tpu.memory_space<smem>>
    %63 = vector.broadcast %62 : f32 to vector<1x128xf32>
    %64 = arith.mulf %61, %63 : vector<1x128xf32>
    %65 = arith.addf %60, %64 : vector<1x128xf32>
    %c1_26 = arith.constant 1 : index
    %c0_27 = arith.constant 0 : index
    %66 = vector.load %arg4[%c1_26, %c0_27] : memref<3x128xf32, #tpu.memory_space<vmem>>, vector<1x128xf32>
    tpu.vector_store %arg4[%c1_26, %c0_27], %65 {strides = array<i32>} : memref<3x128xf32, #tpu.memory_space<vmem>>, vector<1x128xf32>,
    %67 = vector.extract_strided_slice %0 {offsets = [0, 0], sizes = [1, 128], strides = [1, 1]} : vector<6x128xf32> to vector<1x128xf32>
    %c0_28 = arith.constant 0 : index
    %c2_29 = arith.constant 2 : index
    %68 = memref.load %arg2[%c0_28, %c2_29] : memref<6x3xf32, #tpu.memory_space<smem>>
    %69 = vector.broadcast %68 : f32 to vector<1x128xf32>
    %70 = arith.mulf %67, %69 : vector<1x128xf32>
    %c0_30 = arith.constant 0 : index
    %c2_31 = arith.constant 2 : index
    %71 = memref.load %arg3[%c0_30, %c2_31] : memref<1x3xf32, #tpu.memory_space<smem>>
    %72 = vector.broadcast %71 : f32 to vector<1x128xf32>
    %73 = arith.addf %70, %72 : vector<1x128xf32>
    %74 = vector.extract_strided_slice %0 {offsets = [1, 0], sizes = [1, 128], strides = [1, 1]} : vector<6x128xf32> to vector<1x128xf32>
    %c1_32 = arith.constant 1 : index
    %c2_33 = arith.constant 2 : index
    %75 = memref.load %arg2[%c1_32, %c2_33] : memref<6x3xf32, #tpu.memory_space<smem>>
    %76 = vector.broadcast %75 : f32 to vector<1x128xf32>
    %77 = arith.mulf %74, %76 : vector<1x128xf32>
    %78 = arith.addf %73, %77 : vector<1x128xf32>
    %79 = vector.extract_strided_slice %0 {offsets = [2, 0], sizes = [1, 128], strides = [1, 1]} : vector<6x128xf32> to vector<1x128xf32>
    %c2_34 = arith.constant 2 : index
    %c2_35 = arith.constant 2 : index
    %80 = memref.load %arg2[%c2_34, %c2_35] : memref<6x3xf32, #tpu.memory_space<smem>>
    %81 = vector.broadcast %80 : f32 to vector<1x128xf32>
    %82 = arith.mulf %79, %81 : vector<1x128xf32>
    %83 = arith.addf %78, %82 : vector<1x128xf32>
    %84 = vector.extract_strided_slice %0 {offsets = [3, 0], sizes = [1, 128], strides = [1, 1]} : vector<6x128xf32> to vector<1x128xf32>
    %c3_36 = arith.constant 3 : index
    %c2_37 = arith.constant 2 : index
    %85 = memref.load %arg2[%c3_36, %c2_37] : memref<6x3xf32, #tpu.memory_space<smem>>
    %86 = vector.broadcast %85 : f32 to vector<1x128xf32>
    %87 = arith.mulf %84, %86 : vector<1x128xf32>
    %88 = arith.addf %83, %87 : vector<1x128xf32>
    %89 = vector.extract_strided_slice %0 {offsets = [4, 0], sizes = [1, 128], strides = [1, 1]} : vector<6x128xf32> to vector<1x128xf32>
    %c4_38 = arith.constant 4 : index
    %c2_39 = arith.constant 2 : index
    %90 = memref.load %arg2[%c4_38, %c2_39] : memref<6x3xf32, #tpu.memory_space<smem>>
    %91 = vector.broadcast %90 : f32 to vector<1x128xf32>
    %92 = arith.mulf %89, %91 : vector<1x128xf32>
    %93 = arith.addf %88, %92 : vector<1x128xf32>
    %94 = vector.extract_strided_slice %0 {offsets = [5, 0], sizes = [1, 128], strides = [1, 1]} : vector<6x128xf32> to vector<1x128xf32>
    %c5_40 = arith.constant 5 : index
    %c2_41 = arith.constant 2 : index
    %95 = memref.load %arg2[%c5_40, %c2_41] : memref<6x3xf32, #tpu.memory_space<smem>>
    %96 = vector.broadcast %95 : f32 to vector<1x128xf32>
    %97 = arith.mulf %94, %96 : vector<1x128xf32>
    %98 = arith.addf %93, %97 : vector<1x128xf32>
    %c2_42 = arith.constant 2 : index
    %c0_43 = arith.constant 0 : index
    %99 = vector.load %arg4[%c2_42, %c0_43] : memref<3x128xf32, #tpu.memory_space<vmem>>, vector<1x128xf32>
    tpu.vector_store %arg4[%c2_42, %c0_43], %98 {strides = array<i32>} : memref<3x128xf32, #tpu.memory_space<vmem>>, vector<1x128xf32>,
    return
  }
  func.func @transform_0(%arg0: i32) -> (i32, i32) {
    %c0_i32 = arith.constant 0 : i32
    %c0_i32_0 = arith.constant 0 : i32
    return %c0_i32, %arg0 : i32, i32
  }
  func.func @transform_1(%arg0: i32) -> (i32, i32) {
    %c0_i32 = arith.constant 0 : i32
    %c0_i32_0 = arith.constant 0 : i32
    %c0_i32_1 = arith.constant 0 : i32
    return %c0_i32, %c0_i32_0 : i32, i32
  }
  func.func @transform_2(%arg0: i32) -> (i32, i32) {
    %c0_i32 = arith.constant 0 : i32
    %c0_i32_0 = arith.constant 0 : i32
    %c0_i32_1 = arith.constant 0 : i32
    return %c0_i32, %c0_i32_0 : i32, i32
  }
  func.func @transform_3(%arg0: i32) -> (i32, i32) {
    %c0_i32 = arith.constant 0 : i32
    %c0_i32_0 = arith.constant 0 : i32
    return %c0_i32, %arg0 : i32, i32
  }
}

</mosaic_0001>

<bundles_post_ra>
// kernel: tpu_custom_call.1
= control target key start
LH: loop header
LB: loop body
LE: loop exit
PB: predicated region body
PF: predicated region fallthrough
CT: control target
= control target key end

     0   :  { %8 = vsyncpa [#allocation4], 0  ;;  %s313_s0 = inlined_call_operand.vmem [shape: f32[6,128], index: 0, kind: input, shape index: {}]   ;;  %s314_s1 = inlined_call_operand.vmem [shape: f32[6,3], index: 1, kind: input, shape index: {}]   ;;  %s315_s2 = inlined_call_operand.vmem [shape: f32[1,3], index: 2, kind: input, shape index: {}]   ;;  %s316_s3 = inlined_call_operand.hbm [shape: f32[3,128], index: 3, kind: output, shape index: {}]  }
   0x1   :  { %9 = vsyncpa [#allocation6], 0 }
   0x2   :  { %10 = vsyncpa [#allocation3], 0  ;;  %s19_s14 = sshll.u32 %s314_s1, 4  ;;  %s29_s17 = sshll.u32 %s315_s2, 4  ;;  %s20_s14 = int_to_ptr.vmem [resolvable:$true] %s19_s14  ;;  %s30_s17 = int_to_ptr.vmem [resolvable:$true] %s29_s17 }
   0x3   :  { %s205_s18 = scalar_lea.vmem %s20_s14, 128  ;;  %p210_p1 = scmp.lt.s32.totalorder %s20_s14, %s20_s14 }
   0x4   :  { %p206_p0 = scmp.ne.s32.totalorder %s20_s14, %s205_s18  ;;  %p211_p2 = scmp.lt.s32.totalorder %s205_s18, %s205_s18 }
   0x6   :  { %p212_p3 = por %p211_p2, %p210_p1 }
   0x8   :  { %p213_p4 = pnand %p212_p3, %p206_p0 }
   0xa   :  { %216 = shalt.err (!%p213_p4)
}
   0xb   :  { %s255_s19 = smov [#allocation2]   ;;  %s217_s20 = scalar_lea.vmem %s30_s17, 16 }
   0xc   :  { %22 = dma.vmem_to_smem %s20_s14, 128, %s255_s19, [#allocation4]  }
   0xd   :  { %p218_p5 = scmp.ne.s32.totalorder %s30_s17, %s217_s20  ;;  %p222_p6 = scmp.lt.s32.totalorder %s30_s17, %s30_s17 }
   0xe   :  { %p223_p7 = scmp.lt.s32.totalorder %s217_s20, %s217_s20 }
  0x10   :  { %p224_p8 = por %p223_p7, %p222_p6 }
  0x12   :  { %p225_p9 = pnand %p224_p8, %p218_p5 }
  0x14   :  { %228 = shalt.err (!%p225_p9)
}
  0x15   :  { %s256_s1 = smov [#allocation5]  }
  0x16   :  { %32 = dma.vmem_to_smem %s30_s17, 16, %s256_s1, [#allocation6]  }
  0x17   :  { %249 = dma.done.wait [#allocation4], 128  }
  0x18   :  { %250 = vsyncadd [#allocation4], 4294967168 }
  0x19   :  { %251 = dma.done.wait [#allocation6], 16  }
  0x1a   :  { %252 = vsyncadd [#allocation6], 4294967280 }
  0x1b   :  { %39 = sfence }
  0x1c   :  { %s41_s2 = sld [smem:[#allocation2]]  ;;  %v287_v0 = vld [vmem:[%s313_s0] sm:$0x3f]  ;;  %s257_s15 = smov [#allocation7]  }
  0x1d   :  { %s44_s21 = sld [smem:[#allocation5]]  ;;  %s173_s16 = sshll.u32 %s257_s15, 4  ;;  %s174_s16 = int_to_ptr.vmem [resolvable:$true] %s173_s16 }
  0x1e   :  { %s183_s22 = sld [smem:[#allocation2 + $0x80]]  ;;  %s229_s17 = scalar_lea.vmem %s174_s16, 64 }
  0x1f   :  { %s184_s23 = sld [smem:[#allocation2 + $0x100]]  ;;  %p230_p10 = scmp.ne.s32.totalorder %s174_s16, %s229_s17 }
  0x20   :  { %s185_s26 = sld [smem:[#allocation2 + $0x180]]  ;;  %p234_p11 = scmp.lt.s32.totalorder %s174_s16, %s174_s16 }
  0x21   :  { %s186_s27 = sld [smem:[#allocation2 + $0x200]]  ;;  %p235_p12 = scmp.lt.s32.totalorder %s229_s17, %s229_s17 }
  0x22   :  { %v42_v1 = vstv %s41_s2  ;;  %s187_s28 = sld [smem:[#allocation2 + $0x280]] }
  0x23   :  { %v43_v2 = vmul.f32 %v42_v1, %v287_v0  ;;  %v45_v3 = vstv %s44_s21  ;;  %s188_s29 = sld [smem:[#allocation2 + $0x1]]  ;;  %p236_p13 = por %p235_p12, %p234_p11 }
  0x24   :  { %v48_v4 = vstv %s183_s22  ;;  %s189_s30 = sld [smem:[#allocation5 + $0x1]] }
  0x25   :  { %v46_v5 = vadd.f32 %v45_v3, %v43_v2  ;;  %v49_v6 = vmul.f32 %v48_v4, %v287_v0  ;;  %v55_v7 = vstv %s184_s23  ;;  %s190_s4 = sld [smem:[#allocation2 + $0x81]]  ;;  %p237_p0 = pnand %p236_p13, %p230_p10 }
  0x26   :  { %v56_v8 = vmul.f32 %v55_v7, %v287_v0  ;;  %v62_v9 = vstv %s185_s26  ;;  %s191_s0 = sld [smem:[#allocation2 + $0x101]] }
  0x27   :  { %v51_v10 = vrot.slane %v49_v6, 1  ;;  %v63_v11 = vmul.f32 %v62_v9, %v287_v0  ;;  %v69_v12 = vstv %s186_s27  ;;  %s192_s5 = sld [smem:[#allocation2 + $0x181]] }
  0x28   :  { %v58_v13 = vrot.slane %v56_v8, 2  ;;  %v70_v14 = vmul.f32 %v69_v12, %v287_v0  ;;  %v76_v15 = vstv %s187_s28  ;;  %s193_s6 = sld [smem:[#allocation2 + $0x201]] }
  0x29   :  { %v53_v16 = vadd.f32 %v51_v10, %v46_v5  ;;  %v65_v17 = vrot.slane %v63_v11, 3  ;;  %v77_v18 = vmul.f32 %v76_v15, %v287_v0  ;;  %v84_v19 = vstv %s188_s29  ;;  %s194_s7 = sld [smem:[#allocation2 + $0x281]] }
  0x2a   :  { %v85_v20 = vmul.f32 %v84_v19, %v287_v0  ;;  %v87_v21 = vstv %s189_s30  ;;  %s195_s8 = sld [smem:[#allocation2 + $0x2]]  ;;  %v72_v23 = vrot.slane %v70_v14, 4 }
  0x2b   :  { %v60_v22 = vadd.f32 %v58_v13, %v53_v16  ;;  %v90_v24 = vstv %s190_s4  ;;  %s296_s9 = sld [smem:[#allocation5 + $0x2]]  ;;  %v79_v29 = vrot.slane %v77_v18, 5 }
  0x2c   :  { %v88_v25 = vadd.f32 %v87_v21, %v85_v20  ;;  %v91_v26 = vmul.f32 %v90_v24, %v287_v0  ;;  %v97_v27 = vstv %s191_s0  ;;  %s197_s10 = sld [smem:[#allocation2 + $0x82]] }
  0x2d   :  { %v67_v28 = vadd.f32 %v65_v17, %v60_v22  ;;  %v98_v30 = vmul.f32 %v97_v27, %v287_v0  ;;  %v104_v31 = vstv %s192_s5  ;;  %s198_s11 = sld [smem:[#allocation2 + $0x102]] }
  0x2e   :  { %v93_v32 = vrot.slane %v91_v26, 1  ;;  %v105_v33 = vmul.f32 %v104_v31, %v287_v0  ;;  %v111_v34 = vstv %s193_s6  ;;  %s199_s12 = sld [smem:[#allocation2 + $0x182]] }
  0x2f   :  { %v74_v35 = vadd.f32 %v72_v23, %v67_v28  ;;  %v100_v36 = vrot.slane %v98_v30, 2  ;;  %v112_v37 = vmul.f32 %v111_v34, %v287_v0  ;;  %v118_v38 = vstv %s194_s7  ;;  %s200_s13 = sld [smem:[#allocation2 + $0x202]] }
  0x30   :  { %v95_v39 = vadd.f32 %v93_v32, %v88_v25  ;;  %v107_v40 = vrot.slane %v105_v33, 3  ;;  %v119_v41 = vmul.f32 %v118_v38, %v287_v0  ;;  %v126_v42 = vstv %s195_s8  ;;  %s201_s14 = sld [smem:[#allocation2 + $0x282]] }
  0x31   :  { %v81_v43 = vadd.f32 %v79_v29, %v74_v35  ;;  %v127_v44 = vmul.f32 %v126_v42, %v287_v0  ;;  %v129_v45 = vstv %s296_s9  ;;  %v114_v47 = vrot.slane %v112_v37, 4 }
  0x32   :  { %v102_v46 = vadd.f32 %v100_v36, %v95_v39  ;;  %v132_v48 = vstv %s197_s10  ;;  %v121_v53 = vrot.slane %v119_v41, 5 }
  0x33   :  { %82 = vst [vmem:[#allocation7] sm:$0x1] %v81_v43  ;;  %v130_v49 = vadd.f32 %v129_v45, %v127_v44  ;;  %v133_v50 = vmul.f32 %v132_v48, %v287_v0  ;;  %v139_v51 = vstv %s198_s11 }
  0x34   :  { %v109_v52 = vadd.f32 %v107_v40, %v102_v46  ;;  %v140_v54 = vmul.f32 %v139_v51, %v287_v0  ;;  %v146_v55 = vstv %s199_s12 }
  0x35   :  { %v135_v56 = vrot.slane %v133_v50, 1  ;;  %v147_v57 = vmul.f32 %v146_v55, %v287_v0  ;;  %v153_v58 = vstv %s200_s13 }
  0x36   :  { %v116_v59 = vadd.f32 %v114_v47, %v109_v52  ;;  %v142_v60 = vrot.slane %v140_v54, 2  ;;  %v154_v61 = vmul.f32 %v153_v58, %v287_v0  ;;  %v160_v62 = vstv %s201_s14 }
  0x37   :  { %v137_v63 = vadd.f32 %v135_v56, %v130_v49  ;;  %v149_v1 = vrot.slane %v147_v57, 3  ;;  %v161_v2 = vmul.f32 %v160_v62, %v287_v0 }
  0x38   :  { %v123_v3 = vadd.f32 %v121_v53, %v116_v59  ;;  %v156_v5 = vrot.slane %v154_v61, 4 }
  0x39   :  { %v144_v4 = vadd.f32 %v142_v60, %v137_v63  ;;  %v163_v7 = vrot.slane %v161_v2, 5 }
  0x3a   :  { %124 = vst [vmem:[#allocation7 + $0x1] sm:$0x1] %v123_v3 }
  0x3b   :  { %v151_v6 = vadd.f32 %v149_v1, %v144_v4 }
  0x3d   :  { %v158_v8 = vadd.f32 %v156_v5, %v151_v6 }
  0x3f   :  { %v165_v9 = vadd.f32 %v163_v7, %v158_v8 }
  0x41   :  { %166 = vst [vmem:[#allocation7 + $0x2] sm:$0x1] %v165_v9 }
  0x42   :  { %240 = shalt.err (!%p237_p0)
}
  0x43   :  { %176 = dma.vmem_to_hbm [thread:$0]  %s174_s16, 64, %s316_s3, [#allocation3]  }
  0x44   :  { %253 = dma.done.wait [#allocation3], 64  }
  0x45   :  { %254 = vsyncadd [#allocation3], 4294967232 }
  0x46   :  { %180 = vsyncpa [#allocation3], 1 }
  0x47   :  { %181 = vsyncpa [#allocation4], 1 }
  0x48   :  { %182 = vsyncpa [#allocation6], 1 }

</bundles_post_ra>
